<compile_context>
chip_gen: v6e
topology: v6e:2x2x1
jax: 0.10.0
libtpu: 0.0.40
codegen_flags: <defaults>
</compile_context>

<pallas_src>
import numpy as np
import jax
import jax.numpy as jnp
from jax.experimental import pallas as pl
from jax.experimental.pallas import tpu as pltpu

POOLED = 3            # output_size
SAMPLING = 3          # sampling_ratio
SPATIAL_SCALE = 0.25
M_PAD = 16            # 3*3 = 9 pooled positions, padded to a sublane multiple


# ----------------------------------------------------------------------------
# Wrapper-side weight construction (vectorized over all rois).
# ----------------------------------------------------------------------------
def _axis_weights(start, bin_size, dim):
    """Separable RoIAlign weights averaged over the sampling grid.

    start, bin_size: (R,) f32. Returns (R, POOLED, dim) f32. Row p, column d =
    (1/S) * sum_s hat(clip(coord_{p,s}) - d) * valid(coord_{p,s}), which is
    exactly torchvision's aligned=False bilinear interpolation along one axis
    averaged over the SAMPLING samples of bin p (skipped samples included in
    the divisor, clamp-to-edge, y in [-1, dim] validity window).
    """
    p = jnp.arange(POOLED, dtype=jnp.float32)[None, :, None]     # (1, 3, 1)
    d = jnp.arange(dim, dtype=jnp.float32)[None, None, :]        # (1, 1, dim)
    start = start[:, None, None]                                 # (R, 1, 1)
    bsz = bin_size[:, None, None]                                 # (R, 1, 1)
    w = jnp.zeros((start.shape[0], POOLED, dim), jnp.float32)
    for s in range(SAMPLING):  # static unroll (SAMPLING == 3)
        coord = start + p * bsz + (s + 0.5) * bsz / SAMPLING      # (R, 3, 1)
        valid = (coord >= -1.0) & (coord <= float(dim))
        cc = jnp.clip(coord, 0.0, float(dim - 1))
        hat = jnp.maximum(0.0, 1.0 - jnp.abs(cc - d))             # (R, 3, dim)
        w = w + jnp.where(valid, hat, 0.0)
    return w * (1.0 / SAMPLING)


# ----------------------------------------------------------------------------
# Kernel: a single MXU matmul per (channel-block, roi) grid step.
# ----------------------------------------------------------------------------
def roi_align_kernel(bidx_ref, wyx_ref, x_ref, o_ref):
    # bidx_ref: SMEM (R,) int32 scalar-prefetch (used only by the index_maps)
    # wyx_ref:  VMEM (1, M_PAD, H*W)  fused per-roi bilinear weights
    # x_ref:    VMEM (1, H*W, Cblk)   channels-last feature block, image bidx[r]
    # o_ref:    VMEM (1, M_PAD, Cblk)
    del bidx_ref
    o_ref[0] = jnp.dot(wyx_ref[0], x_ref[0],
                       preferred_element_type=jnp.float32).astype(o_ref.dtype)


# ----------------------------------------------------------------------------
# Wrapper-side tiling / VMEM budgeting.
# ----------------------------------------------------------------------------
def _vmem_capacity_bytes():
    try:
        info = pltpu.get_tpu_info()
        for name in ("vmem_capacity_bytes", "vmem_size_bytes", "vmem_bytes"):
            v = getattr(info, name, None)
            if v:
                return int(v)
    except Exception:
        pass
    return 64 << 20  # conservative fallback (v7x-sized VMEM)


def _pick_cblk(C, HW, itemsize, budget_bytes):
    """Channel-block size: full C if it fits, else largest lane-aligned
    (multiple of 128) divisor that fits, else the largest fitting divisor."""
    per_ch = 2 * HW * itemsize   # double-buffered column of the feature block
    max_c = max(1, budget_bytes // max(per_ch, 1))
    if C <= max_c:
        return C
    best = 0
    for cand in range(128, max_c + 1, 128):
        if C % cand == 0:
            best = cand
    if best:
        return best
    cblk = min(C, max_c)
    while C % cblk:
        cblk -= 1
    return cblk


def roi_align(x, rois):
    N, C, H, W = x.shape
    R = rois.shape[0]
    HW = H * W
    itemsize = jnp.dtype(x.dtype).itemsize

    # ---- per-roi scalar math + fused weights (vectorized over R) -------------
    batch_idx = rois[:, 0].astype(jnp.int32)
    x1 = rois[:, 1] * SPATIAL_SCALE
    y1 = rois[:, 2] * SPATIAL_SCALE
    x2 = rois[:, 3] * SPATIAL_SCALE
    y2 = rois[:, 4] * SPATIAL_SCALE
    roi_w = jnp.maximum(x2 - x1, 1.0)   # aligned=False: clamp roi size >= 1
    roi_h = jnp.maximum(y2 - y1, 1.0)
    wy = _axis_weights(y1, roi_h / POOLED, H)            # (R, 3, H)
    wx = _axis_weights(x1, roi_w / POOLED, W)            # (R, 3, W)
    wyx = jnp.einsum("rph,rqw->rpqhw", wy, wx)           # (R, 3, 3, H, W)
    wyx = wyx.reshape(R, POOLED * POOLED, HW)            # (R, 9, H*W)
    wyx = jnp.pad(wyx, ((0, 0), (0, M_PAD - POOLED * POOLED), (0, 0)))
    wyx = wyx.astype(x.dtype)                            # match matmul dtypes

    # ---- channels-last, spatially-flattened feature map ----------------------
    x_flat = jnp.transpose(x, (0, 2, 3, 1)).reshape(N, HW, C)   # (N, H*W, C)

    # ---- sort rois by image so consecutive grid steps reuse the x block ------
    order = jnp.argsort(batch_idx)
    inv = jnp.argsort(order)
    bidx_s = batch_idx[order]
    wyx_s = wyx[order]

    # ---- tiling / VMEM budget (per-chip via VMEM capacity) --------------------
    cap = _vmem_capacity_bytes()
    block_budget = min(cap // 4, 24 << 20)   # v7x: 16 MiB, v5e/v6e: 24 MiB
    vmem_limit = min(cap // 2, 96 << 20)     # v7x: 32 MiB, v5e/v6e: 64 MiB
    cblk = _pick_cblk(C, HW, itemsize, block_budget)
    n_cblk = C // cblk

    grid = (n_cblk, R)   # roi axis innermost -> x block re-fetch skipped per image
    grid_spec = pltpu.PrefetchScalarGridSpec(
        num_scalar_prefetch=1,               # batch_idx in SMEM (1-D, cheap)
        grid=grid,
        in_specs=[
            pl.BlockSpec((1, M_PAD, HW), lambda cb, r, bidx: (r, 0, 0)),
            pl.BlockSpec((1, HW, cblk), lambda cb, r, bidx: (bidx[r], 0, cb)),
        ],
        out_specs=pl.BlockSpec((1, M_PAD, cblk),
                               lambda cb, r, bidx: (r, 0, cb)),
    )

    out_pad = pl.pallas_call(
        roi_align_kernel,
        out_shape=jax.ShapeDtypeStruct((R, M_PAD, C), x.dtype),
        grid_spec=grid_spec,
        compiler_params=pltpu.CompilerParams(
            dimension_semantics=("parallel", "arbitrary"),
            vmem_limit_bytes=int(vmem_limit)),
    )(bidx_s, wyx_s, x_flat)

    # un-permute rois, drop zero-padded rows, back to (R, C, 3, 3)
    out = out_pad[inv][:, :POOLED * POOLED, :]
    out = out.reshape(R, POOLED, POOLED, C)
    return jnp.transpose(out, (0, 3, 1, 2))


# ----------------------------------------------------------------------------
# Pure-numpy torchvision-semantics reference.
# ----------------------------------------------------------------------------
def roi_align_ref(x, rois):
    N, C, H, W = x.shape
    outs = []
    for r in range(rois.shape[0]):
        b = int(rois[r, 0])
        x1, y1, x2, y2 = (float(v) * SPATIAL_SCALE for v in rois[r, 1:])
        rw = max(x2 - x1, 1.0)
        rh = max(y2 - y1, 1.0)
        bw = rw / POOLED
        bh = rh / POOLED
        out = np.zeros((C, POOLED, POOLED), np.float32)
        for ph in range(POOLED):
            for pw in range(POOLED):
                acc = np.zeros((C,), np.float32)
                for iy in range(SAMPLING):
                    for ix in range(SAMPLING):
                        yy = y1 + ph * bh + (iy + 0.5) * bh / SAMPLING
                        xx = x1 + pw * bw + (ix + 0.5) * bw / SAMPLING
                        if yy < -1.0 or yy > H or xx < -1.0 or xx > W:
                            continue
                        yy = max(yy, 0.0)
                        xx = max(xx, 0.0)
                        y_lo, x_lo = int(yy), int(xx)
                        if y_lo >= H - 1:
                            y_hi = y_lo = H - 1
                            yy = float(y_lo)
                        else:
                            y_hi = y_lo + 1
                        if x_lo >= W - 1:
                            x_hi = x_lo = W - 1
                            xx = float(x_lo)
                        else:
                            x_hi = x_lo + 1
                        ly, lx = yy - y_lo, xx - x_lo
                        hy, hx = 1.0 - ly, 1.0 - lx
                        acc += (hy * hx * x[b, :, y_lo, x_lo]
                                + hy * lx * x[b, :, y_lo, x_hi]
                                + ly * hx * x[b, :, y_hi, x_lo]
                                + ly * lx * x[b, :, y_hi, x_hi])
                out[:, ph, pw] = acc / (SAMPLING * SAMPLING)
        outs.append(out)
    return np.stack(outs)


if __name__ == "__main__":
    key = jax.random.PRNGKey(0)
    x = jax.random.normal(key, (2, 4, 16, 16), dtype=jnp.float32)

    # Module parameter, deterministic as in __init__:
    rois = jnp.array([[0.0, 0.0, 10.0, 12.0, 20.0]], dtype=jnp.float32)
    out = roi_align(x, rois)
    out = jax.block_until_ready(out)
    assert out.shape == (1, 4, 3, 3), out.shape
    ref = roi_align_ref(np.asarray(x), np.asarray(rois))
    np.testing.assert_allclose(np.asarray(out), ref, rtol=1e-4, atol=1e-4)

    # Extra check: multiple rois across both images, unsorted batch order
    # (exercises the sort/unsort path and the batch-indexed x index_map).
    rois2 = jnp.array([[1.0, 4.0, 4.0, 40.0, 40.0],
                       [0.0, 0.0, 10.0, 12.0, 20.0],
                       [1.0, 8.0, 0.0, 60.0, 30.0]], dtype=jnp.float32)
    out2 = jax.block_until_ready(roi_align(x, rois2))
    ref2 = roi_align_ref(np.asarray(x), np.asarray(rois2))
    np.testing.assert_allclose(np.asarray(out2), ref2, rtol=1e-4, atol=1e-4)

    print("KERNEL_OK")
</pallas_src>

<mosaic_0001>
module attributes {stable_mosaic.version = 11 : i64} {
  func.func @roi_align_kernel(%arg0: i32, %arg1: i32, %arg2: memref<1xi32, #tpu.memory_space<smem>>, %arg3: memref<1x16x256xf32, #tpu.memory_space<vmem>>, %arg4: memref<1x256x4xf32, #tpu.memory_space<vmem>>, %arg5: memref<1x16x4xf32, #tpu.memory_space<vmem>>) attributes {dimension_semantics = [#tpu.dimension_semantics<parallel>, #tpu.dimension_semantics<arbitrary>], iteration_bounds = array<i64: 1, 1>, scalar_prefetch = 1 : i64, scratch_operands = 0 : i64, tpu.core_type = #tpu.core_type<tc>, window_params = [{transform_indices = @transform_0, window_bounds = array<i64: 1, 16, 256>}, {transform_indices = @transform_1, window_bounds = array<i64: 1, 256, 4>}, {transform_indices = @transform_2, window_bounds = array<i64: 1, 16, 4>}]} {
    %c0 = arith.constant 0 : index
    %c0_0 = arith.constant 0 : index
    %c0_1 = arith.constant 0 : index
    %0 = vector.load %arg3[%c0, %c0_0, %c0_1] : memref<1x16x256xf32, #tpu.memory_space<vmem>>, vector<1x16x256xf32>
    %1 = vector.shape_cast %0 : vector<1x16x256xf32> to vector<16x256xf32>
    %c0_2 = arith.constant 0 : index
    %c0_3 = arith.constant 0 : index
    %c0_4 = arith.constant 0 : index
    %2 = vector.load %arg4[%c0_2, %c0_3, %c0_4] : memref<1x256x4xf32, #tpu.memory_space<vmem>>, vector<1x256x4xf32>
    %3 = vector.shape_cast %2 : vector<1x256x4xf32> to vector<256x4xf32>
    %cst = arith.constant dense<0.000000e+00> : vector<16x4xf32>
    %4 = tpu.matmul %1, %3, %cst {dimension_numbers = #tpu.dot_dimension_numbers<[1], [0], [0], [1], [0, 0, 1, 1], [], []>} : vector<16x256xf32>, vector<256x4xf32>, vector<16x4xf32> -> vector<16x4xf32>
    %c0_5 = arith.constant 0 : index
    %c0_6 = arith.constant 0 : index
    %c0_7 = arith.constant 0 : index
    %5 = vector.load %arg5[%c0_5, %c0_6, %c0_7] : memref<1x16x4xf32, #tpu.memory_space<vmem>>, vector<1x16x4xf32>
    %6 = vector.shape_cast %5 : vector<1x16x4xf32> to vector<16x4xf32>
    %7 = vector.shape_cast %4 : vector<16x4xf32> to vector<1x16x4xf32>
    tpu.vector_store %arg5[%c0_5, %c0_6, %c0_7], %7 {strides = array<i32>} : memref<1x16x4xf32, #tpu.memory_space<vmem>>, vector<1x16x4xf32>,
    return
  }
  func.func @transform_0(%arg0: i32, %arg1: i32, %arg2: memref<1xi32, #tpu.memory_space<smem>>) -> (i32, i32, i32) {
    %c0_i32 = arith.constant 0 : i32
    %c0_i32_0 = arith.constant 0 : i32
    %c0_i32_1 = arith.constant 0 : i32
    return %arg1, %c0_i32, %c0_i32_0 : i32, i32, i32
  }
  func.func @transform_1(%arg0: i32, %arg1: i32, %arg2: memref<1xi32, #tpu.memory_space<smem>>) -> (i32, i32, i32) {
    %0 = arith.index_cast %arg1 : i32 to index
    %1 = memref.load %arg2[%0] : memref<1xi32, #tpu.memory_space<smem>>
    %c0_i32 = arith.constant 0 : i32
    %c0_i32_0 = arith.constant 0 : i32
    return %1, %c0_i32, %arg0 : i32, i32, i32
  }
  func.func @transform_2(%arg0: i32, %arg1: i32, %arg2: memref<1xi32, #tpu.memory_space<smem>>) -> (i32, i32, i32) {
    %c0_i32 = arith.constant 0 : i32
    %c0_i32_0 = arith.constant 0 : i32
    return %arg1, %c0_i32, %arg0 : i32, i32, i32
  }
}

</mosaic_0001>

<bundles_post_ra>
// kernel: tpu_custom_call.1
= control target key start
LH: loop header
LB: loop body
LE: loop exit
PB: predicated region body
PF: predicated region fallthrough
CT: control target
= control target key end

     0   :  { %vm144_vm0 = vcmask 31744   ;;  %s311_s0 = inlined_call_operand.<no memory space> [shape: s32[1], index: 0, kind: input, shape index: {}]   ;;  %s312_s1 = inlined_call_operand.vmem [shape: f32[1,16,256], index: 1, kind: input, shape index: {}]   ;;  %s313_s2 = inlined_call_operand.vmem [shape: f32[2,256,4], index: 2, kind: input, shape index: {}]   ;;  %s314_s3 = inlined_call_operand.vmem [shape: f32[1,16,4], index: 3, kind: output, shape index: {}]  }
   0x1   :  { %p27_p0 = scmp.lt.s32.totalorder %s311_s0, 1  ;;  %v34_v0 = vld [vmem:[%s312_s1 + $0x8] sm:$0xff]  ;;  %v36_v1 = vld [vmem:[%s312_s1 + $0x18] sm:$0xff]  ;;  %v33_v34 = vld [vmem:[%s312_s1] sm:$0xff] }
   0x2   :  { %133 = vmatprep.mubr.f32.mxu0 %v34_v0  ;;  %138 = vmatprep.mubr.f32.mxu1 %v36_v1  ;;  %v35_v35 = vld [vmem:[%s312_s1 + $0x10] sm:$0xff] }
   0x3   :  { %s316_s0 = smov (!%p27_p0, %s311_s0), 1 }
   0x4   :  { %s159_s20 = sshll.u32 %s316_s0, 8 }
   0x5   :  { %s265_s23 = scalar_lea.vmem %s313_s2, %s159_s20 }
   0x6   :  { %v68_v2 = vld [vmem:[%s265_s23 + $0xf8] sm:$0xff]  ;;  %v67_v4 = vld [vmem:[%s265_s23 + $0xf0] sm:$0xff]  ;;  %v66_v6 = vld [vmem:[%s265_s23 + $0xe8] sm:$0xff] }
   0x7   :  { %v52_v3 = vld [vmem:[%s265_s23 + $0x78] sm:$0xff]  ;;  %160 = vmatprep.subr.mxu0 %v68_v2  ;;  %198 = vmatprep.subr.mxu1 %v68_v2  ;;  %v51_v5 = vld [vmem:[%s265_s23 + $0x70] sm:$0xff]  ;;  %v50_v7 = vld [vmem:[%s265_s23 + $0x68] sm:$0xff] }
   0x8   :  { %161 = vmatpush3.msra.mxu0 %v52_v3  ;;  %214 = vmatpush3.msra.mxu1 %v52_v3  ;;  %v65_v8 = vld [vmem:[%s265_s23 + $0xe0] sm:$0xff]  ;;  %v64_v10 = vld [vmem:[%s265_s23 + $0xd8] sm:$0xff]  ;;  %v63_v12 = vld [vmem:[%s265_s23 + $0xd0] sm:$0xff] }
   0x9   :  { %162 = vmatprep.subr.mxu0 %v67_v4  ;;  %199 = vmatprep.subr.mxu1 %v67_v4  ;;  %v49_v9 = vld [vmem:[%s265_s23 + $0x60] sm:$0xff]  ;;  %v48_v11 = vld [vmem:[%s265_s23 + $0x58] sm:$0xff]  ;;  %v47_v13 = vld [vmem:[%s265_s23 + $0x50] sm:$0xff] }
   0xa   :  { %163 = vmatpush3.msra.mxu0 %v51_v5  ;;  %215 = vmatpush3.msra.mxu1 %v51_v5  ;;  %v62_v14 = vld [vmem:[%s265_s23 + $0xc8] sm:$0xff]  ;;  %v61_v16 = vld [vmem:[%s265_s23 + $0xc0] sm:$0xff]  ;;  %v60_v18 = vld [vmem:[%s265_s23 + $0xb8] sm:$0xff] }
   0xb   :  { %164 = vmatprep.subr.mxu0 %v66_v6  ;;  %200 = vmatprep.subr.mxu1 %v66_v6  ;;  %v46_v15 = vld [vmem:[%s265_s23 + $0x48] sm:$0xff]  ;;  %v45_v17 = vld [vmem:[%s265_s23 + $0x40] sm:$0xff]  ;;  %v44_v19 = vld [vmem:[%s265_s23 + $0x38] sm:$0xff] }
   0xc   :  { %165 = vmatpush3.msra.mxu0 %v50_v7  ;;  %216 = vmatpush3.msra.mxu1 %v50_v7  ;;  %v59_v20 = vld [vmem:[%s265_s23 + $0xb0] sm:$0xff]  ;;  %v58_v22 = vld [vmem:[%s265_s23 + $0xa8] sm:$0xff]  ;;  %v57_v24 = vld [vmem:[%s265_s23 + $0xa0] sm:$0xff] }
   0xd   :  { %166 = vmatprep.subr.mxu0 %v65_v8  ;;  %201 = vmatprep.subr.mxu1 %v65_v8  ;;  %v43_v21 = vld [vmem:[%s265_s23 + $0x30] sm:$0xff]  ;;  %v42_v23 = vld [vmem:[%s265_s23 + $0x28] sm:$0xff]  ;;  %v41_v25 = vld [vmem:[%s265_s23 + $0x20] sm:$0xff] }
   0xe   :  { %167 = vmatpush3.msra.mxu0 %v49_v9  ;;  %217 = vmatpush3.msra.mxu1 %v49_v9  ;;  %v56_v26 = vld [vmem:[%s265_s23 + $0x98] sm:$0xff]  ;;  %v55_v28 = vld [vmem:[%s265_s23 + $0x90] sm:$0xff]  ;;  %v54_v30 = vld [vmem:[%s265_s23 + $0x88] sm:$0xff] }
   0xf   :  { %168 = vmatprep.subr.mxu0 %v64_v10  ;;  %202 = vmatprep.subr.mxu1 %v64_v10  ;;  %v40_v27 = vld [vmem:[%s265_s23 + $0x18] sm:$0xff]  ;;  %v39_v29 = vld [vmem:[%s265_s23 + $0x10] sm:$0xff]  ;;  %v38_v31 = vld [vmem:[%s265_s23 + $0x8] sm:$0xff] }
  0x10   :  { %169 = vmatpush3.msra.mxu0 %v48_v11  ;;  %218 = vmatpush3.msra.mxu1 %v48_v11  ;;  %v53_v32 = vld [vmem:[%s265_s23 + $0x80] sm:$0xff] }
  0x11   :  { %170 = vmatprep.subr.mxu0 %v63_v12  ;;  %203 = vmatprep.subr.mxu1 %v63_v12  ;;  %v37_v33 = vld [vmem:[%s265_s23] sm:$0xff] }
  0x12   :  { %171 = vmatpush3.msra.mxu0 %v47_v13  ;;  %219 = vmatpush3.msra.mxu1 %v47_v13 }
  0x13   :  { %172 = vmatprep.subr.mxu0 %v62_v14  ;;  %204 = vmatprep.subr.mxu1 %v62_v14 }
  0x14   :  { %173 = vmatpush3.msra.mxu0 %v46_v15  ;;  %220 = vmatpush3.msra.mxu1 %v46_v15 }
  0x15   :  { %174 = vmatprep.subr.mxu0 %v61_v16  ;;  %205 = vmatprep.subr.mxu1 %v61_v16 }
  0x16   :  { %175 = vmatpush3.msra.mxu0 %v45_v17  ;;  %221 = vmatpush3.msra.mxu1 %v45_v17 }
  0x17   :  { %176 = vmatprep.subr.mxu0 %v60_v18  ;;  %206 = vmatprep.subr.mxu1 %v60_v18 }
  0x18   :  { %177 = vmatpush3.msra.mxu0 %v44_v19  ;;  %222 = vmatpush3.msra.mxu1 %v44_v19 }
  0x19   :  { %178 = vmatprep.subr.mxu0 %v59_v20  ;;  %207 = vmatprep.subr.mxu1 %v59_v20 }
  0x1a   :  { %179 = vmatpush3.msra.mxu0 %v43_v21  ;;  %223 = vmatpush3.msra.mxu1 %v43_v21 }
  0x1b   :  { %180 = vmatprep.subr.mxu0 %v58_v22  ;;  %208 = vmatprep.subr.mxu1 %v58_v22 }
  0x1c   :  { %181 = vmatpush3.msra.mxu0 %v42_v23  ;;  %224 = vmatpush3.msra.mxu1 %v42_v23 }
  0x1d   :  { %182 = vmatprep.subr.mxu0 %v57_v24  ;;  %209 = vmatprep.subr.mxu1 %v57_v24 }
  0x1e   :  { %183 = vmatpush3.msra.mxu0 %v41_v25  ;;  %225 = vmatpush3.msra.mxu1 %v41_v25 }
  0x1f   :  { %184 = vmatprep.subr.mxu0 %v56_v26  ;;  %210 = vmatprep.subr.mxu1 %v56_v26 }
  0x20   :  { %185 = vmatpush3.msra.mxu0 %v40_v27  ;;  %226 = vmatpush3.msra.mxu1 %v40_v27 }
  0x21   :  { %186 = vmatprep.subr.mxu0 %v55_v28  ;;  %211 = vmatprep.subr.mxu1 %v55_v28 }
  0x22   :  { %187 = vmatpush3.msra.mxu0 %v39_v29  ;;  %227 = vmatpush3.msra.mxu1 %v39_v29 }
  0x23   :  { %188 = vmatprep.subr.mxu0 %v54_v30  ;;  %212 = vmatprep.subr.mxu1 %v54_v30 }
  0x24   :  { %189 = vmatpush3.msra.mxu0 %v38_v31  ;;  %228 = vmatpush3.msra.mxu1 %v38_v31 }
  0x25   :  { %190 = vmatprep.subr.mxu0 %v53_v32  ;;  %213 = vmatprep.subr.mxu1 %v53_v32 }
  0x26   :  { %191 = vmatpush3.msra.mxu0 %v37_v33  ;;  %229 = vmatpush3.msra.mxu1 %v37_v33 }
  0x27   :  { %134 = vmatmul.mubr.f32.vlgmr.msra.gmra.mxu0 %v33_v34  ;;  %139 = vmatmul.mubr.f32.vlgmr.msra.gmra.mxu1 %v35_v35 }
  0xe7   :  { %v192_v36 = vpop.f32.mrf.mxu0  ;;  %v195_v37 = vpop.f32.mrf.mxu1 }
  0xe9   :  { %v193_v38 = vpop.f32.mrf.mxu0  ;;  %v196_v39 = vpop.f32.mrf.mxu1 }
  0xea   :  { %v194_v40 = vadd.f32 %v193_v38, %v192_v36  ;;  %v197_v41 = vadd.f32 %v196_v39, %v195_v37 }
  0xec   :  { %145 = vst.msk [vmem:[%s314_s3] sm:$0xff] %vm144_vm0, %v194_v40  ;;  %146 = vst.msk [vmem:[%s314_s3 + $0x8] sm:$0xff] %vm144_vm0, %v197_v41 }

</bundles_post_ra>
